<compile_context>
chip_gen: v6e
topology: v6e:2x2x1
jax: 0.10.0
libtpu: 0.0.40
codegen_flags: <defaults>
</compile_context>

<pallas_src>
import functools

import jax
import jax.numpy as jnp
from jax.experimental import pallas as pl
from jax.experimental.pallas import tpu as pltpu


def multihop_kernel(x_ref, ei_ref, o_ref, *, num_hop):
    x = x_ref[...]                        # [N, H] f32
    ei = ei_ref[...]                      # [2, E] i32 (single DMA)
    src = ei[0:1, :]                      # [1, E] i32  (sublane slice, in-vreg, free)
    dst = ei[1:2, :]                      # [1, E] i32
    N = x.shape[0]
    E = src.shape[1]

    # ---- dense adjacency (to_dense_adj): adj[n, m] = #edges n -> m ------------------
    # Two 0/1 one-hots (exact in bf16) contracted over the edge axis on the MXU with
    # f32 accumulation -> exact integer edge counts.
    node_iota = jax.lax.broadcasted_iota(jnp.int32, (N, E), 0)
    src_oh = (src == node_iota).astype(jnp.bfloat16)        # [N, E], 1{src_e == n}
    dst_oh = (dst == node_iota).astype(jnp.bfloat16)        # [N, E], 1{dst_e == m}
    adj = jax.lax.dot_general(
        src_oh, dst_oh,
        dimension_numbers=(((1,), (1,)), ((), ())),
        preferred_element_type=jnp.float32,
    )                                                       # [N, N] f32 counts

    # ---- multi-hop reachability counts (statically unrolled) ------------------------
    # bf16 operands / f32 accumulation: positive counts can never round to zero, so the
    # downstream (ind != 0) test is exact.
    adj_bf = adj.astype(jnp.bfloat16)
    high_bf = adj_bf
    ind = adj                                               # f32 accumulator
    for _ in range(num_hop - 1):
        high = jnp.dot(high_bf, adj_bf, preferred_element_type=jnp.float32)
        ind = ind + high
        high_bf = high.astype(jnp.bfloat16)

    # ---- reachability mask, deferred row normalization ------------------------------
    mask01 = (ind != 0).astype(jnp.float32)                 # [N, N] pure 0/1
    ctx = jnp.dot(mask01, x, preferred_element_type=jnp.float32)   # [N, H]
    denom = jnp.sum(mask01, axis=-1, keepdims=True)         # [N, 1]
    inv = 1.0 / denom                                       # exact: 0 -> inf, 0*inf = NaN
    o_ref[...] = ctx * inv                                  # matches torch 0/0 -> NaN rows


def multihop_context(x, edge_index, num_hop):
    """Pallas forward of MultiHopContext: single fused kernel, everything in VMEM.

    Note: adjacency is sized by N = x.shape[0] (all nodes), which is the robust
    generalization of torch_geometric.to_dense_adj's max(edge_index)+1 sizing.
    """
    N, H = x.shape
    ei = edge_index.astype(jnp.int32)                       # [2, E], one input DMA
    vmem = pl.BlockSpec(memory_space=pltpu.MemorySpace.VMEM)
    kernel = functools.partial(multihop_kernel, num_hop=num_hop)
    return pl.pallas_call(
        kernel,
        out_shape=jax.ShapeDtypeStruct((N, H), jnp.float32),
        in_specs=[vmem, vmem],
        out_specs=vmem,
    )(x, ei)


# ----------------------------- reference (pure JAX) ---------------------------------
def multihop_context_ref(x, edge_index, num_hop):
    N = x.shape[0]
    adj = jnp.zeros((N, N), jnp.float32).at[edge_index[0], edge_index[1]].add(1.0)
    high = adj
    ind = adj
    for _ in range(num_hop - 1):
        high = high @ adj
        ind = ind + high
    mask = (ind != 0).astype(jnp.float32)
    mask = mask / mask.sum(axis=-1, keepdims=True)
    return mask @ x


if __name__ == "__main__":
    N, E, H = 16, 32, 128
    NUM_HOP = 3

    key = jax.random.PRNGKey(0)
    k_x, k_e = jax.random.split(key)

    x = jax.random.normal(k_x, (N, H), jnp.float32)

    # Edge index: a full cycle (every node has an outgoing edge -> no 0/0 rows,
    # and node N-1 appears so to_dense_adj size matches N) plus random extra edges.
    cycle_src = jnp.arange(N, dtype=jnp.int32)
    cycle_dst = (cycle_src + 1) % N
    rnd = jax.random.randint(k_e, (2, E - N), 0, N, jnp.int32)
    edge_index = jnp.stack(
        [jnp.concatenate([cycle_src, rnd[0]]),
         jnp.concatenate([cycle_dst, rnd[1]])], axis=0)      # [2, E]

    out = multihop_context(x, edge_index, NUM_HOP)
    out = jax.block_until_ready(out)

    ref = multihop_context_ref(x, edge_index, NUM_HOP)
    assert out.shape == (N, H)
    assert jnp.allclose(out, ref, rtol=1e-4, atol=1e-4), "mismatch vs JAX reference"

    print("KERNEL_OK")
</pallas_src>

<mosaic_0001>
module attributes {stable_mosaic.version = 11 : i64} {
  func.func @multihop_kernel(%arg0: memref<16x128xf32, #tpu.memory_space<vmem>>, %arg1: memref<2x32xi32, #tpu.memory_space<vmem>>, %arg2: memref<16x128xf32, #tpu.memory_space<vmem>>) attributes {dimension_semantics = [], scalar_prefetch = 0 : i64, scratch_operands = 0 : i64, tpu.core_type = #tpu.core_type<tc>} {
    %c0 = arith.constant 0 : index
    %c0_0 = arith.constant 0 : index
    %0 = vector.load %arg0[%c0, %c0_0] : memref<16x128xf32, #tpu.memory_space<vmem>>, vector<16x128xf32>
    %c0_1 = arith.constant 0 : index
    %c0_2 = arith.constant 0 : index
    %1 = vector.load %arg1[%c0_1, %c0_2] : memref<2x32xi32, #tpu.memory_space<vmem>>, vector<2x32xi32>
    %2 = vector.extract_strided_slice %1 {offsets = [0, 0], sizes = [1, 32], strides = [1, 1]} : vector<2x32xi32> to vector<1x32xi32>
    %3 = vector.extract_strided_slice %1 {offsets = [1, 0], sizes = [1, 32], strides = [1, 1]} : vector<2x32xi32> to vector<1x32xi32>
    %4 = tpu.iota {dimensions = array<i32: 0>} : vector<16x32xi32>
    %5 = vector.broadcast %2 : vector<1x32xi32> to vector<16x32xi32>
    %6 = arith.cmpi eq, %5, %4 : vector<16x32xi32>
    %7 = arith.extui %6 : vector<16x32xi1> to vector<16x32xi32>
    %8 = arith.sitofp %7 : vector<16x32xi32> to vector<16x32xf32>
    %9 = arith.truncf %8 : vector<16x32xf32> to vector<16x32xbf16>
    %10 = vector.broadcast %3 : vector<1x32xi32> to vector<16x32xi32>
    %11 = arith.cmpi eq, %10, %4 : vector<16x32xi32>
    %12 = arith.extui %11 : vector<16x32xi1> to vector<16x32xi32>
    %13 = arith.sitofp %12 : vector<16x32xi32> to vector<16x32xf32>
    %14 = arith.truncf %13 : vector<16x32xf32> to vector<16x32xbf16>
    %cst = arith.constant dense<0.000000e+00> : vector<16x16xf32>
    %15 = tpu.matmul %9, %14, %cst {dimension_numbers = #tpu.dot_dimension_numbers<[1], [1], [0], [0], [0, 0, 1, 0], [], []>} : vector<16x32xbf16>, vector<16x32xbf16>, vector<16x16xf32> -> vector<16x16xf32>
    %16 = arith.truncf %15 : vector<16x16xf32> to vector<16x16xbf16>
    %cst_3 = arith.constant dense<0.000000e+00> : vector<16x16xf32>
    %17 = tpu.matmul %16, %16, %cst_3 {dimension_numbers = #tpu.dot_dimension_numbers<[1], [0], [0], [1], [0, 0, 1, 1], [], []>} : vector<16x16xbf16>, vector<16x16xbf16>, vector<16x16xf32> -> vector<16x16xf32>
    %18 = arith.addf %15, %17 : vector<16x16xf32>
    %19 = arith.truncf %17 : vector<16x16xf32> to vector<16x16xbf16>
    %cst_4 = arith.constant dense<0.000000e+00> : vector<16x16xf32>
    %20 = tpu.matmul %19, %16, %cst_4 {dimension_numbers = #tpu.dot_dimension_numbers<[1], [0], [0], [1], [0, 0, 1, 1], [], []>} : vector<16x16xbf16>, vector<16x16xbf16>, vector<16x16xf32> -> vector<16x16xf32>
    %21 = arith.addf %18, %20 : vector<16x16xf32>
    %cst_5 = arith.constant 0.000000e+00 : f32
    %22 = vector.broadcast %cst_5 : f32 to vector<16x16xf32>
    %23 = arith.cmpf one, %21, %22 : vector<16x16xf32>
    %24 = arith.extui %23 : vector<16x16xi1> to vector<16x16xi32>
    %25 = arith.sitofp %24 : vector<16x16xi32> to vector<16x16xf32>
    %cst_6 = arith.constant dense<0.000000e+00> : vector<16x128xf32>
    %26 = tpu.matmul %25, %0, %cst_6 {dimension_numbers = #tpu.dot_dimension_numbers<[1], [0], [0], [1], [0, 0, 1, 1], [], []>} : vector<16x16xf32>, vector<16x128xf32>, vector<16x128xf32> -> vector<16x128xf32>
    %cst_7 = arith.constant dense<0.000000e+00> : vector<16xf32>
    %27 = vector.multi_reduction <add>, %25, %cst_7 [1] : vector<16x16xf32> to vector<16xf32>
    %28 = vector.shape_cast %27 : vector<16xf32> to vector<16x1xf32>
    %cst_8 = arith.constant 1.000000e+00 : f32
    %29 = vector.broadcast %cst_8 : f32 to vector<16x1xf32>
    %30 = arith.divf %29, %28 : vector<16x1xf32>
    %31 = vector.broadcast %30 : vector<16x1xf32> to vector<16x128xf32>
    %32 = arith.mulf %26, %31 : vector<16x128xf32>
    %c0_9 = arith.constant 0 : index
    %c0_10 = arith.constant 0 : index
    %33 = vector.load %arg2[%c0_9, %c0_10] : memref<16x128xf32, #tpu.memory_space<vmem>>, vector<16x128xf32>
    tpu.vector_store %arg2[%c0_9, %c0_10], %32 {strides = array<i32>} : memref<16x128xf32, #tpu.memory_space<vmem>>, vector<16x128xf32>,
    return
  }
}

</mosaic_0001>

<bundles_post_ra>
// kernel: tpu_custom_call.1
= control target key start
LH: loop header
LB: loop body
LE: loop exit
PB: predicated region body
PF: predicated region fallthrough
CT: control target
= control target key end

     0   :  { %7 = vsyncpa [#allocation3], 0  ;;  %s510_s0 = inlined_call_operand.hbm [shape: f32[16,128], index: 0, kind: input, shape index: {}]   ;;  %s511_s1 = inlined_call_operand.hbm [shape: s32[2,32], index: 1, kind: input, shape index: {}]   ;;  %s512_s2 = inlined_call_operand.hbm [shape: f32[16,128], index: 2, kind: output, shape index: {}]  }
   0x1   :  { %8 = vsyncpa [#allocation6], 0 }
   0x2   :  { %9 = vsyncpa [#allocation4], 0  ;;  %s452_s9 = smov [#allocation2]  }
   0x3   :  { %s15_s10 = sshll.u32 %s452_s9, 4  ;;  %s16_s10 = int_to_ptr.vmem [resolvable:$true] %s15_s10 }
   0x4   :  { %s394_s11 = scalar_lea.vmem %s16_s10, 256  ;;  %p399_p1 = scmp.lt.s32.totalorder %s16_s10, %s16_s10 }
   0x5   :  { %p395_p0 = scmp.ne.s32.totalorder %s16_s10, %s394_s11  ;;  %p400_p2 = scmp.lt.s32.totalorder %s394_s11, %s394_s11 }
   0x7   :  { %p401_p3 = por %p400_p2, %p399_p1 }
   0x9   :  { %p402_p4 = pnand %p401_p3, %p395_p0 }
   0xb   :  { %405 = shalt.err (!%p402_p4)
}
   0xc   :  { %s453_s12 = smov 128   ;;  %s454_s13 = smov 8  }
   0xd   :  { %21 = dma.hbm_to_vmem [thread:$0]  %s510_s0, 256, %s16_s10, [#allocation3], %s453_s12, %s453_s12, %s454_s13  }
   0xe   :  { %s455_s16 = smov [#allocation5]  }
   0xf   :  { %s28_s17 = sshll.u32 %s455_s16, 4  ;;  %s29_s17 = int_to_ptr.vmem [resolvable:$true] %s28_s17 }
  0x10   :  { %s414_s18 = scalar_lea.vmem %s29_s17, 32  ;;  %p419_p6 = scmp.lt.s32.totalorder %s29_s17, %s29_s17 }
  0x11   :  { %p415_p5 = scmp.ne.s32.totalorder %s29_s17, %s414_s18  ;;  %p420_p7 = scmp.lt.s32.totalorder %s414_s18, %s414_s18 }
  0x13   :  { %p421_p8 = por %p420_p7, %p419_p6 }
  0x15   :  { %p422_p9 = pnand %p421_p8, %p415_p5 }
  0x17   :  { %425 = shalt.err (!%p422_p9)
}
  0x18   :  { %31 = dma.hbm_to_vmem [thread:$0]  %s511_s1, 32, %s29_s17, [#allocation6]  }
  0x19   :  { %446 = dma.done.wait [#allocation3], 256  }
  0x1a   :  { %447 = vsyncadd [#allocation3], 4294967040 }
  0x1b   :  { %448 = dma.done.wait [#allocation6], 32  }
  0x1c   :  { %449 = vsyncadd [#allocation6], 4294967264  ;;  %v42_v0 = vlaneseq  ;;  %v456_v1 = vmov 0.0   ;;  %vm457_vm0 = vmmov 0   ;;  %v41_v6 = vld [vmem:[#allocation5] sm:$0x3] }
  0x1d   :  { %350 = vmatprep.subr.bf16.mxu0 %v456_v1  ;;  %352 = vmatprep.mubr.msk.bf16.mxu0 %vm457_vm0, %v456_v1  ;;  %vm67_vm3 = vcmask 261120   ;;  %vm116_vm6 = vcmask 130048   ;;  %v40_v26 = vld [vmem:[#allocation2 + $0x8] sm:$0xff]  ;;  %v39_v27 = vld [vmem:[#allocation2] sm:$0xff]  ;;  %s458_s0 = smov [#allocation7]  }
  0x1e   :  { %v43_v2 = vshrl.u32 %v42_v0, 7  ;;  %356 = vmatprep.subr.bf16.mxu1 %v456_v1  ;;  %358 = vmatprep.mubr.msk.bf16.mxu1 %vm457_vm0, %v456_v1  ;;  %s316_s1 = sshll.u32 %s458_s0, 4  ;;  %s317_s1 = int_to_ptr.vmem [resolvable:$true] %s316_s1 }
  0x1f   :  { %s426_s21 = scalar_lea.vmem %s317_s1, 256  ;;  %p431_p11 = scmp.lt.s32.totalorder %s317_s1, %s317_s1 }
  0x20   :  { %v47_v3 = vsub.s32 0, %v43_v2  ;;  %v58_v4 = vsub.s32 1, %v43_v2  ;;  %v44_v5 = vadd.s32 8, %v43_v2  ;;  %p427_p10 = scmp.ne.s32.totalorder %s317_s1, %s426_s21  ;;  %p432_p12 = scmp.lt.s32.totalorder %s426_s21, %s426_s21 }
  0x22   :  { %v48_v7 = vrot.slane %v41_v6, %v47_v3  ;;  %v59_v8 = vrot.slane %v41_v6, %v58_v4  ;;  %p433_p13 = por %p432_p12, %p431_p11 }
  0x24   :  { %vm60_vm1 = vcmp.eq.s32.totalorder %v59_v8, %v43_v2  ;;  %vm61_vm2 = vcmp.eq.s32.totalorder %v59_v8, %v44_v5  ;;  %vm50_vm4 = vcmp.eq.s32.totalorder %v48_v7, %v44_v5  ;;  %vm49_vm5 = vcmp.eq.s32.totalorder %v48_v7, %v43_v2  ;;  %p434_p0 = pnand %p433_p13, %p427_p10 }
  0x25   :  { %v331_v9 = vsel %vm60_vm1, 1.0, %v456_v1  ;;  %v332_v10 = vsel %vm61_vm2, 1.0, %v456_v1  ;;  %v329_v13 = vsel %vm49_vm5, 1.0, %v456_v1  ;;  %v330_v14 = vsel %vm50_vm4, 1.0, %v456_v1 }
  0x26   :  { %v66_v11 = vpack.c.bf16 %v332_v10, %v331_v9  ;;  %v55_v15 = vpack.c.bf16 %v330_v14, %v329_v13 }
  0x28   :  { %v72_v12 = vsel %vm67_vm3, %v66_v11, 0 }
  0x29   :  { %351 = vmatpush3.bf16.xpose.msra.mxu0 %v72_v12 }
  0x2a   :  { %368 = vmatprep.subr.mxu0 %v40_v26 }
  0x30   :  { %353 = vmatmul.mubr.msk.bf16.vlgmr.msra.gmra.mxu0 %vm67_vm3, %v55_v15 }
  0x31   :  { %369 = vmatpush3.msra.mxu0 %v40_v26 }
  0x32   :  { %370 = vmatprep.subr.mxu0 %v39_v27 }
  0x33   :  { %371 = vmatpush3.msra.mxu0 %v39_v27 }
  0xf0   :  { %v108_v16 = vpop.f32.mrf.mxu0 }
  0xf2   :  { %v354_v17 = vpop.f32.mrf.mxu0 }
  0xf4   :  { %v111_v18 = vpop.f32.mrf.mxu0 }
  0xf5   :  { %v115_v19 = vpack.c.bf16 %v111_v18, %v108_v16 }
  0xf6   :  { %v355_v20 = vpop.f32.mrf.mxu0 }
  0xf7   :  { %357 = vmatpush3.bf16.msra.mxu1 %v115_v19 }
  0xf8   :  { %362 = vmatprep.subr.bf16.mxu1 %v456_v1 }
  0xfa   :  { %359 = vmatmul.mubr.msk.bf16.vlgmr.msra.gmra.mxu1 %vm116_vm6, %v115_v19 }
  0xfb   :  { %363 = vmatpush3.bf16.msra.mxu1 %v115_v19  ;;  %364 = vmatprep.mubr.msk.bf16.mxu1 %vm457_vm0, %v456_v1 }
 0x1ba   :  { %v154_v21 = vpop.f32.mrf.mxu1 }
 0x1bb   :  { %v161_v28 = vadd.f32 %v154_v21, %v108_v16 }
 0x1bc   :  { %v360_v22 = vpop.f32.mrf.mxu1 }
 0x1be   :  { %v157_v23 = vpop.f32.mrf.mxu1 }
 0x1bf   :  { %v163_v24 = vpack.c.bf16 %v157_v23, %v154_v21  ;;  %v162_v32 = vadd.f32 %v157_v23, %v111_v18 }
 0x1c0   :  { %v361_v25 = vpop.f32.mrf.mxu1 }
 0x1c1   :  { %365 = vmatmul.mubr.msk.bf16.vlgmr.msra.gmra.mxu1 %vm116_vm6, %v163_v24 }
 0x281   :  { %v201_v29 = vpop.f32.mrf.mxu1 }
 0x282   :  { %v208_v30 = vadd.f32 %v201_v29, %v161_v28 }
 0x283   :  { %v366_v31 = vpop.f32.mrf.mxu1 }
 0x284   :  { %vm210_vm7 = vcmp.ne.f32.partialorder %v208_v30, 0.0 }
 0x285   :  { %v336_v33 = vsel %vm210_vm7, 1.0, %v456_v1  ;;  %v204_v34 = vpop.f32.mrf.mxu1 }
 0x286   :  { %v209_v35 = vadd.f32 %v204_v34, %v162_v32  ;;  %372 = vmatprep.mubr.msk.f32.mxu0 %vm116_vm6, %v336_v33  ;;  %v297_v36 = vsel %vm116_vm6, %v336_v33, 0.0 }
 0x287   :  { %298 = vadd.xlane.f32.xlu0 %v297_v36  ;;  %v367_v37 = vpop.f32.mrf.mxu1 }
 0x288   :  { %vm211_vm8 = vcmp.ne.f32.partialorder %v209_v35, 0.0 }
 0x289   :  { %v337_v38 = vsel %vm211_vm8, 1.0, %v456_v1 }
 0x28a   :  { %373 = vmatmul.mubr.msk.f32.vlgmr.msra.gmra.mxu0 %vm116_vm6, %v337_v38  ;;  %v300_v39 = vsel %vm116_vm6, %v337_v38, 0.0 }
 0x28b   :  { %301 = vadd.xlane.f32.xlu0 %v300_v39 }
 0x310   :  { %v299_v40 = vpop.xlane.xlu0 %298 }
 0x314   :  { %v302_v41 = vpop.xlane.xlu0 %301 }
 0x315   :  { %382 = vrcp.f32 %v302_v41 }
 0x316   :  { %384 = vrcp.f32 %v299_v40 }
 0x322   :  { %v383_v42 = vpop.eup %382 }
 0x323   :  { %v385_v45 = vpop.eup %384 }
 0x34a   :  { %v374_v43 = vpop.f32.mrf.mxu0 }
 0x34b   :  { %v308_v44 = vmul.f32 %v383_v42, %v374_v43 }
 0x34c   :  { %v288_v46 = vpop.f32.mrf.mxu0 }
 0x34d   :  { %310 = vst [vmem:[#allocation7 + $0x8] sm:$0xff] %v308_v44  ;;  %v307_v47 = vmul.f32 %v385_v45, %v288_v46 }
 0x34f   :  { %309 = vst [vmem:[#allocation7] sm:$0xff] %v307_v47 }
 0x350   :  { %437 = shalt.err (!%p434_p0)
}
 0x351   :  { %322 = dma.vmem_to_hbm [thread:$0]  %s317_s1, 256, %s512_s2, [#allocation4], %s453_s12, %s453_s12, %s454_s13  }
 0x352   :  { %450 = dma.done.wait [#allocation4], 256  }
 0x353   :  { %451 = vsyncadd [#allocation4], 4294967040 }
 0x354   :  { %326 = vsyncpa [#allocation3], 1 }
 0x355   :  { %327 = vsyncpa [#allocation6], 1 }
 0x356   :  { %328 = vsyncpa [#allocation4], 1 }

</bundles_post_ra>
